<compile_context>
chip_gen: v6e
topology: v6e:2x2x1
jax: 0.10.0
libtpu: 0.0.40
codegen_flags: <defaults>
</compile_context>

<pallas_src>
import math
import jax
import jax.numpy as jnp
from jax.experimental import pallas as pl
from jax.experimental.pallas import tpu as pltpu


# ----------------------------------------------------------------------------
# helpers
# ----------------------------------------------------------------------------
def _triple(v):
    if isinstance(v, (tuple, list)):
        assert len(v) == 3
        return tuple(int(t) for t in v)
    return (int(v),) * 3


def _round_up(x, m):
    return ((x + m - 1) // m) * m


def _choose_bm(M):
    """Large M tiles (~512 rows) to amortize per-step overhead, but keep >= 2
    grid blocks when possible so both TensorCores (v7x megacore) get work."""
    if M >= 1024:
        return 512
    bm = _round_up(max(8, (M + 1) // 2), 8)   # ~M/2, multiple of 8
    return min(bm, _round_up(M, 8))


# ----------------------------------------------------------------------------
# Pallas kernel: (bm, Cin) @ (Cin, Ncol) + bias  ->  (bm, Ncol)
#   - full-extent K block (no K padding, no accumulator scratch)
#   - full-extent N block (no padded output columns)
#   - bias added in the epilogue (one pass, no separate HBM sweep)
# ----------------------------------------------------------------------------
def _convt_mm_kernel(x_ref, w_ref, b_ref, o_ref):
    acc = jnp.dot(x_ref[...], w_ref[...], preferred_element_type=jnp.float32)
    o_ref[...] = (acc + b_ref[...]).astype(o_ref.dtype)


def _convt_matmul(x2, w2, bias_row, out_dtype, compute_dtype):
    """x2: (M, Cin), w2: (Cin, Ncol), bias_row: (1, Ncol) -> (M, Ncol)."""
    M, Cin = x2.shape
    _, Ncol = w2.shape

    bm = _choose_bm(M)
    Mp = _round_up(M, bm)

    xk = x2.astype(compute_dtype)
    if Mp != M:
        xk = jnp.pad(xk, ((0, Mp - M), (0, 0)))   # pad M only (tail block)
    wk = w2.astype(compute_dtype)
    bk = bias_row.astype(jnp.float32)

    out = pl.pallas_call(
        _convt_mm_kernel,
        out_shape=jax.ShapeDtypeStruct((Mp, Ncol), out_dtype),
        grid_spec=pltpu.PrefetchScalarGridSpec(
            num_scalar_prefetch=0,
            grid=(Mp // bm,),
            in_specs=[
                pl.BlockSpec((bm, Cin), lambda i: (i, 0)),    # K full extent
                pl.BlockSpec((Cin, Ncol), lambda i: (0, 0)),  # whole weight
                pl.BlockSpec((1, Ncol), lambda i: (0, 0)),    # bias row
            ],
            out_specs=pl.BlockSpec((bm, Ncol), lambda i: (i, 0)),
        ),
        compiler_params=pltpu.CompilerParams(
            dimension_semantics=("parallel",),
            vmem_limit_bytes=32 * 1024 * 1024,   # safe on v5e/v6e/v7x
        ),
    )(xk, wk, bk)

    if Mp != M:
        out = out[:M]
    return out


# ----------------------------------------------------------------------------
# ConvTranspose3d forward
# ----------------------------------------------------------------------------
def conv_transpose3d(x, w, b, stride, padding, compute_dtype=jnp.bfloat16):
    """
    x: (N, Cin, D, H, W)          -- NCDHW
    w: (Cin, Cout, Kd, Kh, Kw)    -- PyTorch ConvTranspose3d weight layout
    b: (Cout,) or None
    returns NCDHW: (N, Cout, (D-1)*sd - 2*pd + Kd, ..., ...)
    """
    stride = _triple(stride)
    padding = _triple(padding)
    N, Cin, D, H, W = x.shape
    _, Cout, Kd, Kh, Kw = w.shape
    sd, sh, sw = stride
    pd, ph, pw = padding

    M = N * D * H * W
    Ncol = Cout * Kd * Kh * Kw
    Kvol = Kd * Kh * Kw
    out_dtype = x.dtype

    x2 = jnp.transpose(x, (0, 2, 3, 4, 1)).reshape(M, Cin)   # (M, Cin)
    w2 = w.reshape(Cin, Ncol)                                # (Cin, Ncol)

    fast_path = (stride == (Kd, Kh, Kw)) and (padding == (0, 0, 0))

    if fast_path:
        # Non-overlapping upsampling (rsunet config, and the k=1/s=1 default):
        # every output voxel is produced by exactly one (input voxel, kernel
        # offset) pair, so bias folds into the kernel epilogue and col2vol is
        # a pure depth-to-space transpose+reshape (one pass, no scatter-add).
        if b is not None:
            bias_row = jnp.repeat(b.astype(jnp.float32), Kvol).reshape(1, Ncol)
        else:
            bias_row = jnp.zeros((1, Ncol), jnp.float32)

        y = _convt_matmul(x2, w2, bias_row, out_dtype, compute_dtype)
        y = y.reshape(N, D, H, W, Cout, Kd, Kh, Kw)
        out = jnp.transpose(y, (0, 4, 1, 5, 2, 6, 3, 7)).reshape(
            N, Cout, D * Kd, H * Kh, W * Kw
        )
        return out

    # ------------------------------------------------------------------
    # General (overlapping-stride and/or padded) fallback.
    # TODO(synk): fuse this col2vol scatter-add + bias into a Pallas epilogue
    # gridded over output tiles; rsunet's ConvT always takes the fast path.
    # ------------------------------------------------------------------
    bias_row = jnp.zeros((1, Ncol), jnp.float32)
    y = _convt_matmul(x2, w2, bias_row, jnp.float32, compute_dtype)
    y = y.reshape(N, D, H, W, Cout, Kd, Kh, Kw)

    Df = (D - 1) * sd + Kd
    Hf = (H - 1) * sh + Kh
    Wf = (W - 1) * sw + Kw
    out = jnp.zeros((N, Cout, Df, Hf, Wf), jnp.float32)
    for kz in range(Kd):
        for ky in range(Kh):
            for kx in range(Kw):
                contrib = jnp.transpose(
                    y[:, :, :, :, :, kz, ky, kx], (0, 4, 1, 2, 3)
                )  # (N, Cout, D, H, W)
                out = out.at[
                    :, :,
                    kz : kz + (D - 1) * sd + 1 : sd,
                    ky : ky + (H - 1) * sh + 1 : sh,
                    kx : kx + (W - 1) * sw + 1 : sw,
                ].add(contrib)

    out = out[
        :, :,
        pd : (Df - pd) if pd else None,
        ph : (Hf - ph) if ph else None,
        pw : (Wf - pw) if pw else None,
    ]
    if b is not None:
        out = out + b[None, :, None, None, None]
    return out.astype(out_dtype)


# ----------------------------------------------------------------------------
# ConvT module equivalent: deterministic MSRA init (kaiming_normal, fan_in) +
# zero bias, matching the PyTorch module.
# ----------------------------------------------------------------------------
def make_convt_params(key, in_channels, out_channels, kernel_size, bias=True):
    kd, kh, kw = _triple(kernel_size)
    w_shape = (in_channels, out_channels, kd, kh, kw)
    # torch kaiming_normal (fan_in): for ConvTranspose weight (Cin, Cout, k...)
    # fan_in = size(1) * receptive_field = Cout * kd*kh*kw
    fan_in = out_channels * kd * kh * kw
    std = math.sqrt(2.0 / fan_in)
    w = std * jax.random.normal(key, w_shape, dtype=jnp.float32)
    b = jnp.zeros((out_channels,), jnp.float32) if bias else None
    return w, b


def convt_forward(x, w, b, stride, padding, compute_dtype=jnp.bfloat16):
    return conv_transpose3d(x, w, b, stride, padding, compute_dtype=compute_dtype)


# ----------------------------------------------------------------------------
# Pure-JAX reference (independent of Pallas path) for verification
# ----------------------------------------------------------------------------
def ref_conv_transpose3d(x, w, b, stride, padding):
    stride = _triple(stride)
    padding = _triple(padding)
    kd, kh, kw = w.shape[2:]
    w_flip = w[:, :, ::-1, ::-1, ::-1]
    w_conv = jnp.transpose(w_flip, (1, 0, 2, 3, 4))  # (Cout, Cin, kd, kh, kw)
    pads = [
        (kd - 1 - padding[0], kd - 1 - padding[0]),
        (kh - 1 - padding[1], kh - 1 - padding[1]),
        (kw - 1 - padding[2], kw - 1 - padding[2]),
    ]
    out = jax.lax.conv_general_dilated(
        x, w_conv,
        window_strides=(1, 1, 1),
        padding=pads,
        lhs_dilation=stride,
        rhs_dilation=(1, 1, 1),
        dimension_numbers=("NCDHW", "OIDHW", "NCDHW"),
    )
    if b is not None:
        out = out + b[None, :, None, None, None]
    return out


if __name__ == "__main__":
    key = jax.random.PRNGKey(0)
    k_x, k_w = jax.random.split(key)

    # --- Case 1: rsunet upsampling ConvT: kernel=(1,2,2), stride=(1,2,2) ----
    in_channels, out_channels = 4, 8
    kernel_size = (1, 2, 2)
    stride = (1, 2, 2)
    padding = (0, 0, 0)

    x = jax.random.normal(k_x, (2, in_channels, 4, 8, 8), dtype=jnp.float32)
    w, b = make_convt_params(k_w, in_channels, out_channels, kernel_size, bias=True)
    ref = jax.block_until_ready(ref_conv_transpose3d(x, w, b, stride, padding))

    # bf16 operands, f32 accumulation (v6e/v7x recommendation)
    out_bf16 = jax.block_until_ready(
        convt_forward(x, w, b, stride, padding, compute_dtype=jnp.bfloat16)
    )
    assert out_bf16.shape == ref.shape, (out_bf16.shape, ref.shape)
    assert jnp.allclose(out_bf16, ref, rtol=3e-2, atol=3e-2), float(
        jnp.max(jnp.abs(out_bf16 - ref))
    )

    # f32 operands for exactness check
    out_f32 = jax.block_until_ready(
        convt_forward(x, w, b, stride, padding, compute_dtype=jnp.float32)
    )
    assert jnp.allclose(out_f32, ref, rtol=1e-4, atol=1e-4), float(
        jnp.max(jnp.abs(out_f32 - ref))
    )

    # --- Case 2: module defaults: kernel=1, stride=1, padding=0 (fast path) -
    w1, b1 = make_convt_params(k_w, in_channels, out_channels, 1, bias=True)
    out1 = jax.block_until_ready(
        convt_forward(x, w1, b1, 1, 0, compute_dtype=jnp.float32)
    )
    ref1 = jax.block_until_ready(ref_conv_transpose3d(x, w1, b1, 1, 0))
    assert out1.shape == ref1.shape
    assert jnp.allclose(out1, ref1, rtol=1e-4, atol=1e-4), float(
        jnp.max(jnp.abs(out1 - ref1))
    )

    # --- Case 3: general overlapping + padded config (fallback path) --------
    w2_, b2_ = make_convt_params(k_w, in_channels, out_channels, (2, 2, 2), bias=True)
    out2 = jax.block_until_ready(
        convt_forward(x, w2_, b2_, (1, 1, 1), (1, 1, 1), compute_dtype=jnp.float32)
    )
    ref2 = jax.block_until_ready(
        ref_conv_transpose3d(x, w2_, b2_, (1, 1, 1), (1, 1, 1))
    )
    assert out2.shape == ref2.shape
    assert jnp.allclose(out2, ref2, rtol=1e-4, atol=1e-4), float(
        jnp.max(jnp.abs(out2 - ref2))
    )

    print("KERNEL_OK")
</pallas_src>

<mosaic_0001>
module attributes {stable_mosaic.version = 11 : i64} {
  func.func @_convt_mm_kernel(%arg0: i32, %arg1: memref<256x4xbf16, #tpu.memory_space<vmem>>, %arg2: memref<4x32xbf16, #tpu.memory_space<vmem>>, %arg3: memref<1x32xf32, #tpu.memory_space<vmem>>, %arg4: memref<256x32xf32, #tpu.memory_space<vmem>>) attributes {dimension_semantics = [#tpu.dimension_semantics<parallel>], iteration_bounds = array<i64: 2>, scalar_prefetch = 0 : i64, scratch_operands = 0 : i64, tpu.core_type = #tpu.core_type<tc>, window_params = [{transform_indices = @transform_0, window_bounds = array<i64: 256, 4>}, {pipeline_mode = #tpu.pipeline_mode<synchronous>, transform_indices = @transform_1, window_bounds = array<i64: 4, 32>}, {pipeline_mode = #tpu.pipeline_mode<synchronous>, transform_indices = @transform_2, window_bounds = array<i64: 1, 32>}, {transform_indices = @transform_3, window_bounds = array<i64: 256, 32>}]} {
    %c0 = arith.constant 0 : index
    %c0_0 = arith.constant 0 : index
    %0 = vector.load %arg1[%c0, %c0_0] : memref<256x4xbf16, #tpu.memory_space<vmem>>, vector<256x4xbf16>
    %c0_1 = arith.constant 0 : index
    %c0_2 = arith.constant 0 : index
    %1 = vector.load %arg2[%c0_1, %c0_2] : memref<4x32xbf16, #tpu.memory_space<vmem>>, vector<4x32xbf16>
    %cst = arith.constant dense<0.000000e+00> : vector<256x32xf32>
    %2 = tpu.matmul %0, %1, %cst {dimension_numbers = #tpu.dot_dimension_numbers<[1], [0], [0], [1], [0, 0, 1, 1], [], []>} : vector<256x4xbf16>, vector<4x32xbf16>, vector<256x32xf32> -> vector<256x32xf32>
    %c0_3 = arith.constant 0 : index
    %c0_4 = arith.constant 0 : index
    %3 = vector.load %arg3[%c0_3, %c0_4] : memref<1x32xf32, #tpu.memory_space<vmem>>, vector<1x32xf32>
    %4 = vector.broadcast %3 : vector<1x32xf32> to vector<256x32xf32>
    %5 = arith.addf %2, %4 : vector<256x32xf32>
    %c0_5 = arith.constant 0 : index
    %c0_6 = arith.constant 0 : index
    %6 = vector.load %arg4[%c0_5, %c0_6] : memref<256x32xf32, #tpu.memory_space<vmem>>, vector<256x32xf32>
    tpu.vector_store %arg4[%c0_5, %c0_6], %5 {strides = array<i32>} : memref<256x32xf32, #tpu.memory_space<vmem>>, vector<256x32xf32>,
    return
  }
  func.func @transform_0(%arg0: i32) -> (i32, i32) {
    %c0_i32 = arith.constant 0 : i32
    %c0_i32_0 = arith.constant 0 : i32
    return %arg0, %c0_i32 : i32, i32
  }
  func.func @transform_1(%arg0: i32) -> (i32, i32) {
    %c0_i32 = arith.constant 0 : i32
    %c0_i32_0 = arith.constant 0 : i32
    %c0_i32_1 = arith.constant 0 : i32
    return %c0_i32, %c0_i32_0 : i32, i32
  }
  func.func @transform_2(%arg0: i32) -> (i32, i32) {
    %c0_i32 = arith.constant 0 : i32
    %c0_i32_0 = arith.constant 0 : i32
    %c0_i32_1 = arith.constant 0 : i32
    return %c0_i32, %c0_i32_0 : i32, i32
  }
  func.func @transform_3(%arg0: i32) -> (i32, i32) {
    %c0_i32 = arith.constant 0 : i32
    %c0_i32_0 = arith.constant 0 : i32
    return %arg0, %c0_i32 : i32, i32
  }
}

</mosaic_0001>

<bundles_post_ra>
// kernel: tpu_custom_call.1
= control target key start
LH: loop header
LB: loop body
LE: loop exit
PB: predicated region body
PF: predicated region fallthrough
CT: control target
= control target key end

     0   :  { %s749_s12 = smov 0   ;;  %s910_s0 = inlined_call_operand.vmem [shape: bf16[512,4], index: 0, kind: input, shape index: {}]   ;;  %s911_s1 = inlined_call_operand.vmem [shape: bf16[4,32], index: 1, kind: input, shape index: {}]   ;;  %s912_s2 = inlined_call_operand.vmem [shape: f32[1,32], index: 2, kind: input, shape index: {}]   ;;  %s913_s3 = inlined_call_operand.vmem [shape: f32[512,32], index: 3, kind: output, shape index: {}]  }
   0x1 LB: > { %s598_s13 = sadd.s32 4294967295, %s727_s12   ;;  %p602_p0 = scmp.ge.s32.totalorder %s727_s12, 1  ;;  %s727_s12 = sphi %s749_s12, %s13_s12  }
   0x2   : > { %p138_p1 = scmp.lt.s32.totalorder %s727_s12, 3 }
   0x4   : > { %p139_p2 = pnand %p602_p0, %p138_p1 }
   0x5   : > { %s603_s16 = sshll.u32 (!%p139_p2), %s598_s13, 5 }
   0x6   : > { %142 = sbr.rel (%p139_p2) target bundleno = 243 (0xf3), region = 32  ;;  %p163_p3 = scmp.lt.s32.totalorder (!%p139_p2), %s603_s16, 63 }
   0xb   : > { %v207_v0 = vld [vmem:[%s911_s1] sm:$0x3]  ;;  %vm344_vm0 = vcmask 1041408   ;;  %s915_s16 = smov (!%p163_p3, %s603_s16), 63  ;;  %vm295_vm1 = vcmask 31744   ;;  %vm509_vm2 = vcmask 261120  }
   0xc   : > { %695 = vmatprep.subr.msk.bf16.mxu0 %vm344_vm0, %v207_v0  ;;  %696 = vmatprep.subr.msk.bf16.mxu1 %vm344_vm0, %v207_v0  ;;  %v346_v1 = vsel %vm344_vm0, %v207_v0, 0  ;;  %s604_s17 = sshll.u32 %s915_s16, 2  ;;  %s606_s21 = sshll.u32 %s915_s16, 3  ;;  %v804_v18 = vld [vmem:[%s912_s2] ss:$0 sm:$0xff] }
   0xd   : > { %660 = vmatpush3.bf16.msra.mxu0 %v346_v1  ;;  %694 = vmatpush3.bf16.msra.mxu1 %v346_v1  ;;  %s766_s20 = scalar_lea.vmem %s910_s0, %s604_s17  ;;  %s809_s26 = scalar_lea.vmem %s913_s3, %s606_s21 }
   0xe   : > { %v705_v2 = vld [vmem:[%s766_s20] sm:$0xff]   ;;  %v707_v4 = vld [vmem:[%s766_s20 + $0x8] sm:$0xff]   ;;  %v709_v6 = vld [vmem:[%s766_s20 + $0x10] sm:$0xff]  }
   0xf   : > { %v706_v3 = vld [vmem:[%s766_s20 + $0x40] sm:$0xff]   ;;  %661 = vmatprep.mubr.msk.bf16.mxu0 %vm295_vm1, %v705_v2  ;;  %v708_v5 = vld [vmem:[%s766_s20 + $0x48] sm:$0xff]   ;;  %v710_v7 = vld [vmem:[%s766_s20 + $0x50] sm:$0xff]  }
  0x10   : > { %677 = vmatprep.mubr.msk.bf16.mxu1 %vm295_vm1, %v706_v3  ;;  %662 = vmatmul.mubr.msk.bf16.vlgmr.msra.gmra.mxu0 %vm295_vm1, %v707_v4  ;;  %v711_v8 = vld [vmem:[%s766_s20 + $0x18] sm:$0xff]   ;;  %v713_v10 = vld [vmem:[%s766_s20 + $0x20] sm:$0xff]   ;;  %v715_v12 = vld [vmem:[%s766_s20 + $0x28] sm:$0xff]  }
  0x11   : > { %678 = vmatmul.mubr.msk.bf16.vlgmr.msra.gmra.mxu1 %vm295_vm1, %v708_v5  ;;  %665 = vmatprep.mubr.msk.bf16.mxu0 %vm295_vm1, %v709_v6  ;;  %v712_v9 = vld [vmem:[%s766_s20 + $0x58] sm:$0xff]   ;;  %v714_v11 = vld [vmem:[%s766_s20 + $0x60] sm:$0xff]   ;;  %v716_v13 = vld [vmem:[%s766_s20 + $0x68] sm:$0xff]  }
  0x12   : > { %681 = vmatprep.mubr.msk.bf16.mxu1 %vm295_vm1, %v710_v7  ;;  %v717_v14 = vld [vmem:[%s766_s20 + $0x30] sm:$0xff]   ;;  %v719_v16 = vld [vmem:[%s766_s20 + $0x38] sm:$0xff]  }
  0x13   : > { %v718_v15 = vld [vmem:[%s766_s20 + $0x70] sm:$0xff]   ;;  %v720_v17 = vld [vmem:[%s766_s20 + $0x78] sm:$0xff]  }
  0x18   : > { %666 = vmatmul.mubr.msk.bf16.gmra.mxu0 %vm295_vm1, %v711_v8 }
  0x19   : > { %682 = vmatmul.mubr.msk.bf16.gmra.mxu1 %vm295_vm1, %v712_v9  ;;  %669 = vmatprep.mubr.msk.bf16.mxu0 %vm295_vm1, %v713_v10 }
  0x1a   : > { %685 = vmatprep.mubr.msk.bf16.mxu1 %vm295_vm1, %v714_v11 }
  0x20   : > { %670 = vmatmul.mubr.msk.bf16.gmra.mxu0 %vm295_vm1, %v715_v12 }
  0x21   : > { %686 = vmatmul.mubr.msk.bf16.gmra.mxu1 %vm295_vm1, %v716_v13  ;;  %673 = vmatprep.mubr.msk.bf16.mxu0 %vm295_vm1, %v717_v14 }
  0x22   : > { %689 = vmatprep.mubr.msk.bf16.mxu1 %vm295_vm1, %v718_v15 }
  0x28   : > { %674 = vmatmul.mubr.msk.bf16.gmra.mxu0 %vm295_vm1, %v719_v16 }
  0x29   : > { %690 = vmatmul.mubr.msk.bf16.gmra.mxu1 %vm295_vm1, %v720_v17 }
  0xd0   : > { %v663_v19 = vpop.f32.mrf.mxu0 }
  0xd1   : > { %v391_v20 = vadd.f32 %v663_v19, %v804_v18  ;;  %v679_v21 = vpop.f32.mrf.mxu1 }
  0xd2   : > { %v455_v22 = vadd.f32 %v679_v21, %v804_v18  ;;  %v382_v23 = vpop.f32.mrf.mxu0 }
  0xd3   : > { %512 = vst.msk [vmem:[%s809_s26 + $0x10] sm:$0xff] %vm509_vm2, %v391_v20  ;;  %v383_v24 = vadd.f32 %v804_v18, %v382_v23  ;;  %v446_v25 = vpop.f32.mrf.mxu1 }
  0xd4   : > { %528 = vst.msk [vmem:[%s809_s26 + $0x90] sm:$0xff] %vm509_vm2, %v455_v22  ;;  %v447_v26 = vadd.f32 %v804_v18, %v446_v25  ;;  %v664_v27 = vpop.f32.mrf.mxu0 }
  0xd5   : > { %510 = vst.msk [vmem:[%s809_s26] sm:$0xff] %vm509_vm2, %v383_v24  ;;  %v394_v28 = vadd.f32 %v664_v27, %v804_v18  ;;  %v680_v29 = vpop.f32.mrf.mxu1 }
  0xd6   : > { %526 = vst.msk [vmem:[%s809_s26 + $0x80] sm:$0xff] %vm509_vm2, %v447_v26  ;;  %v458_v30 = vadd.f32 %v680_v29, %v804_v18  ;;  %v385_v31 = vpop.f32.mrf.mxu0 }
  0xd7   : > { %513 = vst.msk [vmem:[%s809_s26 + $0x18] sm:$0xff] %vm509_vm2, %v394_v28  ;;  %v386_v32 = vadd.f32 %v804_v18, %v385_v31  ;;  %v449_v33 = vpop.f32.mrf.mxu1 }
  0xd8   : > { %529 = vst.msk [vmem:[%s809_s26 + $0x98] sm:$0xff] %vm509_vm2, %v458_v30  ;;  %v450_v34 = vadd.f32 %v804_v18, %v449_v33  ;;  %v667_v35 = vpop.f32.mrf.mxu0 }
  0xd9   : > { %511 = vst.msk [vmem:[%s809_s26 + $0x8] sm:$0xff] %vm509_vm2, %v386_v32  ;;  %v407_v36 = vadd.f32 %v667_v35, %v804_v18  ;;  %v683_v37 = vpop.f32.mrf.mxu1 }
  0xda   : > { %527 = vst.msk [vmem:[%s809_s26 + $0x88] sm:$0xff] %vm509_vm2, %v450_v34  ;;  %v471_v38 = vadd.f32 %v683_v37, %v804_v18  ;;  %v398_v39 = vpop.f32.mrf.mxu0 }
  0xdb   : > { %516 = vst.msk [vmem:[%s809_s26 + $0x30] sm:$0xff] %vm509_vm2, %v407_v36  ;;  %v399_v40 = vadd.f32 %v804_v18, %v398_v39  ;;  %v462_v41 = vpop.f32.mrf.mxu1 }
  0xdc   : > { %532 = vst.msk [vmem:[%s809_s26 + $0xb0] sm:$0xff] %vm509_vm2, %v471_v38  ;;  %v463_v42 = vadd.f32 %v804_v18, %v462_v41  ;;  %v668_v43 = vpop.f32.mrf.mxu0 }
  0xdd   : > { %514 = vst.msk [vmem:[%s809_s26 + $0x20] sm:$0xff] %vm509_vm2, %v399_v40  ;;  %v410_v44 = vadd.f32 %v668_v43, %v804_v18  ;;  %v684_v45 = vpop.f32.mrf.mxu1 }
  0xde   : > { %530 = vst.msk [vmem:[%s809_s26 + $0xa0] sm:$0xff] %vm509_vm2, %v463_v42  ;;  %v474_v46 = vadd.f32 %v684_v45, %v804_v18  ;;  %v401_v47 = vpop.f32.mrf.mxu0 }
  0xdf   : > { %517 = vst.msk [vmem:[%s809_s26 + $0x38] sm:$0xff] %vm509_vm2, %v410_v44  ;;  %v402_v48 = vadd.f32 %v804_v18, %v401_v47  ;;  %v465_v49 = vpop.f32.mrf.mxu1 }
  0xe0   : > { %533 = vst.msk [vmem:[%s809_s26 + $0xb8] sm:$0xff] %vm509_vm2, %v474_v46  ;;  %v466_v50 = vadd.f32 %v804_v18, %v465_v49  ;;  %v671_v51 = vpop.f32.mrf.mxu0 }
  0xe1   : > { %515 = vst.msk [vmem:[%s809_s26 + $0x28] sm:$0xff] %vm509_vm2, %v402_v48  ;;  %v423_v52 = vadd.f32 %v671_v51, %v804_v18  ;;  %v687_v53 = vpop.f32.mrf.mxu1 }
  0xe2   : > { %531 = vst.msk [vmem:[%s809_s26 + $0xa8] sm:$0xff] %vm509_vm2, %v466_v50  ;;  %v487_v54 = vadd.f32 %v687_v53, %v804_v18  ;;  %v414_v55 = vpop.f32.mrf.mxu0 }
  0xe3   : > { %520 = vst.msk [vmem:[%s809_s26 + $0x50] sm:$0xff] %vm509_vm2, %v423_v52  ;;  %v415_v56 = vadd.f32 %v804_v18, %v414_v55  ;;  %v478_v57 = vpop.f32.mrf.mxu1 }
  0xe4   : > { %536 = vst.msk [vmem:[%s809_s26 + $0xd0] sm:$0xff] %vm509_vm2, %v487_v54  ;;  %v479_v58 = vadd.f32 %v804_v18, %v478_v57  ;;  %v672_v59 = vpop.f32.mrf.mxu0 }
  0xe5   : > { %518 = vst.msk [vmem:[%s809_s26 + $0x40] sm:$0xff] %vm509_vm2, %v415_v56  ;;  %v426_v60 = vadd.f32 %v672_v59, %v804_v18  ;;  %v688_v61 = vpop.f32.mrf.mxu1 }
  0xe6   : > { %534 = vst.msk [vmem:[%s809_s26 + $0xc0] sm:$0xff] %vm509_vm2, %v479_v58  ;;  %v490_v62 = vadd.f32 %v688_v61, %v804_v18  ;;  %v417_v63 = vpop.f32.mrf.mxu0 }
  0xe7   : > { %521 = vst.msk [vmem:[%s809_s26 + $0x58] sm:$0xff] %vm509_vm2, %v426_v60  ;;  %v418_v0 = vadd.f32 %v804_v18, %v417_v63  ;;  %v481_v1 = vpop.f32.mrf.mxu1 }
  0xe8   : > { %537 = vst.msk [vmem:[%s809_s26 + $0xd8] sm:$0xff] %vm509_vm2, %v490_v62  ;;  %v482_v2 = vadd.f32 %v804_v18, %v481_v1  ;;  %v675_v3 = vpop.f32.mrf.mxu0 }
  0xe9   : > { %519 = vst.msk [vmem:[%s809_s26 + $0x48] sm:$0xff] %vm509_vm2, %v418_v0  ;;  %v439_v4 = vadd.f32 %v675_v3, %v804_v18  ;;  %v691_v5 = vpop.f32.mrf.mxu1 }
  0xea   : > { %535 = vst.msk [vmem:[%s809_s26 + $0xc8] sm:$0xff] %vm509_vm2, %v482_v2  ;;  %v503_v6 = vadd.f32 %v691_v5, %v804_v18  ;;  %v430_v7 = vpop.f32.mrf.mxu0 }
  0xeb   : > { %524 = vst.msk [vmem:[%s809_s26 + $0x70] sm:$0xff] %vm509_vm2, %v439_v4  ;;  %v431_v8 = vadd.f32 %v804_v18, %v430_v7  ;;  %v494_v9 = vpop.f32.mrf.mxu1 }
  0xec   : > { %540 = vst.msk [vmem:[%s809_s26 + $0xf0] sm:$0xff] %vm509_vm2, %v503_v6  ;;  %v495_v10 = vadd.f32 %v804_v18, %v494_v9  ;;  %v676_v11 = vpop.f32.mrf.mxu0 }
  0xed   : > { %522 = vst.msk [vmem:[%s809_s26 + $0x60] sm:$0xff] %vm509_vm2, %v431_v8  ;;  %v442_v12 = vadd.f32 %v676_v11, %v804_v18  ;;  %v692_v13 = vpop.f32.mrf.mxu1 }
  0xee   : > { %538 = vst.msk [vmem:[%s809_s26 + $0xe0] sm:$0xff] %vm509_vm2, %v495_v10  ;;  %v506_v14 = vadd.f32 %v692_v13, %v804_v18  ;;  %v433_v15 = vpop.f32.mrf.mxu0 }
  0xef   : > { %525 = vst.msk [vmem:[%s809_s26 + $0x78] sm:$0xff] %vm509_vm2, %v442_v12  ;;  %v434_v16 = vadd.f32 %v804_v18, %v433_v15  ;;  %v497_v17 = vpop.f32.mrf.mxu1 }
  0xf0   : > { %541 = vst.msk [vmem:[%s809_s26 + $0xf8] sm:$0xff] %vm509_vm2, %v506_v14  ;;  %v498_v19 = vadd.f32 %v804_v18, %v497_v17 }
  0xf1   : > { %523 = vst.msk [vmem:[%s809_s26 + $0x68] sm:$0xff] %vm509_vm2, %v434_v16 }
  0xf2   : > { %539 = vst.msk [vmem:[%s809_s26 + $0xe8] sm:$0xff] %vm509_vm2, %v498_v19 }
  0xf3 PF: > { %s13_s12 = sadd.s32 1, %s727_s12  }
  0xf4   : > { %p10_p4 = scmp.ge.s32.totalorder %s13_s12, 4  }
  0xf6   :  { %12 = sbr.rel (!%p10_p4) target bundleno = 1 (0x1), region = 62 }

</bundles_post_ra>
